<compile_context>
chip_gen: v7x
topology: tpu7x:2x2x1
jax: 0.10.0
libtpu: 0.0.40
codegen_flags: <defaults>
</compile_context>

<pallas_src>
import functools

import jax
import jax.numpy as jnp
from jax.experimental import pallas as pl
from jax.experimental.pallas import tpu as pltpu

# ----------------------- model configuration -----------------------
IN_DIM = 79
HIDDEN = 128
OUT_DIM = 1
# torch linear layers, in order: (in, out)
LAYER_DIMS = [(IN_DIM, HIDDEN)] + [(HIDDEN, HIDDEN)] * 5 + [(HIDDEN, OUT_DIM)]
RELU_AFTER = {0, 5}                 # ReLU after linear #0 and after linear #5


def _round_up(n, m):
    return ((n + m - 1) // m) * m


# ----------------------- Pallas kernel -----------------------------
def mlp_kernel(x_ref, w_ref, b_ref, wo_ref, bo_ref, o_ref, xs_ref):
    """One batch tile of the folded 3-layer MLP.

    x_ref : (TM, 79)  f32   input tile (streamed, ragged last block allowed)
    w_ref : (2,128,128) bf16 [W0_padded, W_fold] in (in, out) layout, resident
    b_ref : (2, 128)  f32   [b0, b_fold], resident
    wo_ref: (1, 128)  f32   final-layer weight row, resident
    bo_ref: (1,)      f32   final-layer bias scalar (SMEM)
    o_ref : (TM, 1)   f32   output tile
    xs_ref: (TM, 128) f32   VMEM scratch: K-padded input (lanes 79..127 zero)
    """
    # In-kernel 79 -> 128 K padding.  Full zero each step guarantees lanes
    # [79, 128) are exactly 0 (never stale VMEM), then overwrite lanes [0, 79).
    xs_ref[...] = jnp.zeros_like(xs_ref)
    xs_ref[:, :IN_DIM] = x_ref[...]

    # Linear(79->128) with zero-padded K, ReLU.  bf16 MXU operands, f32 acc.
    h = jnp.dot(xs_ref[...].astype(jnp.bfloat16), w_ref[0],
                preferred_element_type=jnp.float32) + b_ref[0:1, :]
    h = jnp.maximum(h, 0.0)

    # Five activation-free Linear(128,128) layers folded into one, then ReLU.
    h = jnp.dot(h.astype(jnp.bfloat16), w_ref[1],
                preferred_element_type=jnp.float32) + b_ref[1:2, :]
    h = jnp.maximum(h, 0.0)

    # Final Linear(128->1) as VPU multiply + lane reduction (no N=1 MXU pass).
    o_ref[...] = jnp.sum(h * wo_ref[0:1, :], axis=-1, keepdims=True) + bo_ref[0]


# ----------------------- wrapper ------------------------------------
@functools.partial(jax.jit, static_argnames=("tm",))
def mlp_forward(x, packed_params, *, tm=2048):
    """x: (B, 79).  packed_params: (W_stack, b_stack, w_out_row, b_out)."""
    W_stack, b_stack, w_out_row, b_out = packed_params
    B = x.shape[0]
    x = x.astype(jnp.float32)

    # Pad batch only to a sublane multiple (8).  The last grid block may be
    # ragged; Pallas drops out-of-bounds output rows and we slice out[:B].
    B8 = _round_up(B, 8)
    if B8 != B:
        x = jnp.pad(x, ((0, B8 - B), (0, 0)))

    # Tile size: as large as practical, but prefer >= 2 grid steps (with a
    # floor of 128 rows) so v7x's two TensorCores both get work.
    TM = min(_round_up(tm, 8), B8)
    half = _round_up((B8 + 1) // 2, 8)
    TM = min(TM, max(half, min(128, B8)))
    grid = (pl.cdiv(B8, TM),)

    out = pl.pallas_call(
        mlp_kernel,
        out_shape=jax.ShapeDtypeStruct((B8, OUT_DIM), jnp.float32),
        grid=grid,
        in_specs=[
            pl.BlockSpec((TM, IN_DIM), lambda i: (i, 0)),             # x tile (streamed)
            pl.BlockSpec((2, HIDDEN, HIDDEN), lambda i: (0, 0, 0)),   # weights (resident)
            pl.BlockSpec((2, HIDDEN), lambda i: (0, 0)),              # biases (resident)
            pl.BlockSpec((1, HIDDEN), lambda i: (0, 0)),              # final weight row
            pl.BlockSpec(memory_space=pltpu.MemorySpace.SMEM),        # final bias scalar
        ],
        out_specs=pl.BlockSpec((TM, OUT_DIM), lambda i: (i, 0)),
        scratch_shapes=[pltpu.VMEM((TM, HIDDEN), jnp.float32)],       # K-pad scratch
        compiler_params=pltpu.CompilerParams(
            dimension_semantics=("parallel",),
            vmem_limit_bytes=32 * 1024 * 1024,
        ),
    )(x, W_stack, b_stack, w_out_row, b_out)

    return out[:B]


# ----------------------- parameter init (torch layout) ---------------
def init_params(key):
    """Synthetic params matching torch nn.Linear: W (out, in), b (out,)."""
    params = []
    for (d_in, d_out) in LAYER_DIMS:
        key, kw, kb = jax.random.split(key, 3)
        bound = 1.0 / jnp.sqrt(jnp.float32(d_in))
        W = jax.random.uniform(kw, (d_out, d_in), jnp.float32, -bound, bound)
        b = jax.random.uniform(kb, (d_out,), jnp.float32, -bound, bound)
        params.append((W, b))
    return params


# ----------------------- fold + pack (offline) -----------------------
def pack_params(torch_params):
    """Fold the 5 activation-free hidden linears (in f32) and pack for the kernel."""
    (W0, b0) = torch_params[0]
    hidden = torch_params[1:-1]          # 5 x Linear(128,128)
    (W6, b6) = torch_params[-1]          # Linear(128,1): W6 is (1,128)

    # Layer 0 weight in (in, out) layout, K zero-padded 79 -> 128.
    W0_t = jnp.zeros((HIDDEN, HIDDEN), jnp.float32).at[:IN_DIM, :].set(W0.T)

    # Fold h @ W1.T + b1 -> ... -> @ W5.T + b5 into a single affine map (f32).
    Wf = jnp.eye(HIDDEN, dtype=jnp.float32)
    bf = jnp.zeros((HIDDEN,), jnp.float32)
    for (W, b) in hidden:
        Wt = W.T.astype(jnp.float32)
        Wf = Wf @ Wt
        bf = bf @ Wt + b

    W_stack = jnp.stack([W0_t, Wf]).astype(jnp.bfloat16)   # (2,128,128) MXU operands
    b_stack = jnp.stack([b0, bf]).astype(jnp.float32)      # (2,128)  f32
    w_out_row = W6.astype(jnp.float32)                     # (1,128)  f32 (VPU)
    b_out = b6.reshape((1,)).astype(jnp.float32)           # (1,)     f32 (SMEM)
    return W_stack, b_stack, w_out_row, b_out


# ----------------------- reference (plain JAX, unfolded, f32) ----------
def mlp_reference(x, torch_params):
    h = x.astype(jnp.float32)
    for i, (W, b) in enumerate(torch_params):
        h = h @ W.T + b
        if i in RELU_AFTER:
            h = jnp.maximum(h, 0.0)
    return h


# ----------------------- main ---------------------------------------
if __name__ == "__main__":
    key = jax.random.PRNGKey(0)
    key, kx1, kx2, kx3 = jax.random.split(key, 4)

    torch_params = init_params(key)
    packed = pack_params(torch_params)

    # bf16 MXU operands (f32 accumulation) -> loosened tolerance vs f32 ref.
    ATOL, RTOL = 2e-2, 2e-2

    # Case 1: multi-step grid (B=256, tm=128 -> grid=(2,)), full blocks.
    B1 = 256
    x1 = jax.random.normal(kx1, (B1, IN_DIM), jnp.float32)
    out1 = jax.block_until_ready(mlp_forward(x1, packed, tm=128))
    ref1 = mlp_reference(x1, torch_params)
    assert out1.shape == (B1, OUT_DIM), out1.shape
    assert jnp.allclose(out1, ref1, atol=ATOL, rtol=RTOL), (
        f"max abs err = {jnp.max(jnp.abs(out1 - ref1))}")

    # Case 2: ragged last grid block (B=200, tm=128 -> blocks of 128 + 72).
    B2 = 200
    x2 = jax.random.normal(kx2, (B2, IN_DIM), jnp.float32)
    out2 = jax.block_until_ready(mlp_forward(x2, packed, tm=128))
    ref2 = mlp_reference(x2, torch_params)
    assert out2.shape == (B2, OUT_DIM), out2.shape
    assert jnp.allclose(out2, ref2, atol=ATOL, rtol=RTOL), (
        f"max abs err = {jnp.max(jnp.abs(out2 - ref2))}")

    # Case 3: tiny batch (B=5 -> padded to 8 rows only), default tile.
    B3 = 5
    x3 = jax.random.normal(kx3, (B3, IN_DIM), jnp.float32)
    out3 = jax.block_until_ready(mlp_forward(x3, packed))
    ref3 = mlp_reference(x3, torch_params)
    assert out3.shape == (B3, OUT_DIM), out3.shape
    assert jnp.allclose(out3, ref3, atol=ATOL, rtol=RTOL), (
        f"max abs err = {jnp.max(jnp.abs(out3 - ref3))}")

    print("KERNEL_OK")
</pallas_src>

<mosaic_0001>
module attributes {stable_mosaic.version = 11 : i64} {
  func.func @mlp_kernel(%arg0: i32, %arg1: memref<128x79xf32, #tpu.memory_space<vmem>>, %arg2: memref<2x128x128xbf16, #tpu.memory_space<vmem>>, %arg3: memref<2x128xf32, #tpu.memory_space<vmem>>, %arg4: memref<1x128xf32, #tpu.memory_space<vmem>>, %arg5: memref<1xf32, #tpu.memory_space<smem>>, %arg6: memref<128x1xf32, #tpu.memory_space<vmem>>, %arg7: memref<128x128xf32, #tpu.memory_space<vmem>>) attributes {dimension_semantics = [#tpu.dimension_semantics<parallel>], iteration_bounds = array<i64: 2>, scalar_prefetch = 0 : i64, scratch_operands = 1 : i64, tpu.core_type = #tpu.core_type<tc>, window_params = [{transform_indices = @transform_0, window_bounds = array<i64: 128, 79>}, {pipeline_mode = #tpu.pipeline_mode<synchronous>, transform_indices = @transform_1, window_bounds = array<i64: 2, 128, 128>}, {pipeline_mode = #tpu.pipeline_mode<synchronous>, transform_indices = @transform_2, window_bounds = array<i64: 2, 128>}, {pipeline_mode = #tpu.pipeline_mode<synchronous>, transform_indices = @transform_3, window_bounds = array<i64: 1, 128>}, {transform_indices = @transform_4, window_bounds = array<i64: 1>}, {transform_indices = @transform_5, window_bounds = array<i64: 128, 1>}]} {
    %cst = arith.constant 0.000000e+00 : f32
    %0 = vector.broadcast %cst : f32 to vector<128x128xf32>
    %c0 = arith.constant 0 : index
    %c0_0 = arith.constant 0 : index
    %1 = vector.load %arg7[%c0, %c0_0] : memref<128x128xf32, #tpu.memory_space<vmem>>, vector<128x128xf32>
    tpu.vector_store %arg7[%c0, %c0_0], %0 {strides = array<i32>} : memref<128x128xf32, #tpu.memory_space<vmem>>, vector<128x128xf32>,
    %c0_1 = arith.constant 0 : index
    %c0_2 = arith.constant 0 : index
    %2 = vector.load %arg1[%c0_1, %c0_2] : memref<128x79xf32, #tpu.memory_space<vmem>>, vector<128x79xf32>
    %c0_3 = arith.constant 0 : index
    %c0_4 = arith.constant 0 : index
    %3 = vector.load %arg7[%c0_3, %c0_4] : memref<128x128xf32, #tpu.memory_space<vmem>>, vector<128x79xf32>
    tpu.vector_store %arg7[%c0_3, %c0_4], %2 {strides = array<i32>} : memref<128x128xf32, #tpu.memory_space<vmem>>, vector<128x79xf32>,
    %c0_5 = arith.constant 0 : index
    %c0_6 = arith.constant 0 : index
    %4 = vector.load %arg7[%c0_5, %c0_6] : memref<128x128xf32, #tpu.memory_space<vmem>>, vector<128x128xf32>
    %5 = arith.truncf %4 : vector<128x128xf32> to vector<128x128xbf16>
    %c0_7 = arith.constant 0 : index
    %c0_8 = arith.constant 0 : index
    %c0_9 = arith.constant 0 : index
    %6 = vector.load %arg2[%c0_7, %c0_8, %c0_9] : memref<2x128x128xbf16, #tpu.memory_space<vmem>>, vector<1x128x128xbf16>
    %7 = vector.shape_cast %6 : vector<1x128x128xbf16> to vector<128x128xbf16>
    %cst_10 = arith.constant dense<0.000000e+00> : vector<128x128xf32>
    %8 = tpu.matmul %5, %7, %cst_10 {dimension_numbers = #tpu.dot_dimension_numbers<[1], [0], [0], [1], [0, 0, 1, 1], [], []>} : vector<128x128xbf16>, vector<128x128xbf16>, vector<128x128xf32> -> vector<128x128xf32>
    %c0_11 = arith.constant 0 : index
    %c0_12 = arith.constant 0 : index
    %9 = vector.load %arg3[%c0_11, %c0_12] : memref<2x128xf32, #tpu.memory_space<vmem>>, vector<1x128xf32>
    %10 = vector.broadcast %9 : vector<1x128xf32> to vector<128x128xf32>
    %11 = arith.addf %8, %10 : vector<128x128xf32>
    %cst_13 = arith.constant 0.000000e+00 : f32
    %12 = vector.broadcast %cst_13 : f32 to vector<128x128xf32>
    %13 = arith.maximumf %11, %12 : vector<128x128xf32>
    %14 = arith.truncf %13 : vector<128x128xf32> to vector<128x128xbf16>
    %c1 = arith.constant 1 : index
    %c0_14 = arith.constant 0 : index
    %c0_15 = arith.constant 0 : index
    %15 = vector.load %arg2[%c1, %c0_14, %c0_15] : memref<2x128x128xbf16, #tpu.memory_space<vmem>>, vector<1x128x128xbf16>
    %16 = vector.shape_cast %15 : vector<1x128x128xbf16> to vector<128x128xbf16>
    %cst_16 = arith.constant dense<0.000000e+00> : vector<128x128xf32>
    %17 = tpu.matmul %14, %16, %cst_16 {dimension_numbers = #tpu.dot_dimension_numbers<[1], [0], [0], [1], [0, 0, 1, 1], [], []>} : vector<128x128xbf16>, vector<128x128xbf16>, vector<128x128xf32> -> vector<128x128xf32>
    %c1_17 = arith.constant 1 : index
    %c0_18 = arith.constant 0 : index
    %18 = vector.load %arg3[%c1_17, %c0_18] : memref<2x128xf32, #tpu.memory_space<vmem>>, vector<1x128xf32>
    %19 = vector.broadcast %18 : vector<1x128xf32> to vector<128x128xf32>
    %20 = arith.addf %17, %19 : vector<128x128xf32>
    %cst_19 = arith.constant 0.000000e+00 : f32
    %21 = vector.broadcast %cst_19 : f32 to vector<128x128xf32>
    %22 = arith.maximumf %20, %21 : vector<128x128xf32>
    %c0_20 = arith.constant 0 : index
    %c0_21 = arith.constant 0 : index
    %23 = vector.load %arg4[%c0_20, %c0_21] : memref<1x128xf32, #tpu.memory_space<vmem>>, vector<1x128xf32>
    %24 = vector.broadcast %23 : vector<1x128xf32> to vector<128x128xf32>
    %25 = arith.mulf %22, %24 : vector<128x128xf32>
    %cst_22 = arith.constant dense<0.000000e+00> : vector<128xf32>
    %26 = vector.multi_reduction <add>, %25, %cst_22 [1] : vector<128x128xf32> to vector<128xf32>
    %27 = vector.shape_cast %26 : vector<128xf32> to vector<128x1xf32>
    %c0_23 = arith.constant 0 : index
    %28 = memref.load %arg5[%c0_23] : memref<1xf32, #tpu.memory_space<smem>>
    %29 = vector.broadcast %28 : f32 to vector<128x1xf32>
    %30 = arith.addf %27, %29 : vector<128x1xf32>
    %c0_24 = arith.constant 0 : index
    %c0_25 = arith.constant 0 : index
    %31 = vector.load %arg6[%c0_24, %c0_25] : memref<128x1xf32, #tpu.memory_space<vmem>>, vector<128x1xf32>
    tpu.vector_store %arg6[%c0_24, %c0_25], %30 {strides = array<i32>} : memref<128x1xf32, #tpu.memory_space<vmem>>, vector<128x1xf32>,
    return
  }
  func.func @transform_0(%arg0: i32) -> (i32, i32) {
    %c0_i32 = arith.constant 0 : i32
    %c0_i32_0 = arith.constant 0 : i32
    return %arg0, %c0_i32 : i32, i32
  }
  func.func @transform_1(%arg0: i32) -> (i32, i32, i32) {
    %c0_i32 = arith.constant 0 : i32
    %c0_i32_0 = arith.constant 0 : i32
    %c0_i32_1 = arith.constant 0 : i32
    %c0_i32_2 = arith.constant 0 : i32
    return %c0_i32, %c0_i32_0, %c0_i32_1 : i32, i32, i32
  }
  func.func @transform_2(%arg0: i32) -> (i32, i32) {
    %c0_i32 = arith.constant 0 : i32
    %c0_i32_0 = arith.constant 0 : i32
    %c0_i32_1 = arith.constant 0 : i32
    return %c0_i32, %c0_i32_0 : i32, i32
  }
  func.func @transform_3(%arg0: i32) -> (i32, i32) {
    %c0_i32 = arith.constant 0 : i32
    %c0_i32_0 = arith.constant 0 : i32
    %c0_i32_1 = arith.constant 0 : i32
    return %c0_i32, %c0_i32_0 : i32, i32
  }
  func.func @transform_4(%arg0: i32) -> i32 {
    %c0_i32 = arith.constant 0 : i32
    %c0_i32_0 = arith.constant 0 : i32
    return %c0_i32 : i32
  }
  func.func @transform_5(%arg0: i32) -> (i32, i32) {
    %c0_i32 = arith.constant 0 : i32
    %c0_i32_0 = arith.constant 0 : i32
    return %arg0, %c0_i32 : i32, i32
  }
}

</mosaic_0001>

<bundles_post_ra>
// kernel: mlp_forward.1
= control target key start
LH: loop header
LB: loop body
LE: loop exit
PB: predicated region body
PF: predicated region fallthrough
CT: control target
= control target key end

     0   :  { %s1031_s20 = smov 0   ;;  %s1216_s0 = inlined_call_operand.vmem [shape: f32[256,79], index: 0, kind: input, shape index: {}]   ;;  %s1217_s1 = inlined_call_operand.vmem [shape: bf16[2,128,128], index: 1, kind: input, shape index: {}]   ;;  %s1218_s2 = inlined_call_operand.vmem [shape: f32[2,128], index: 2, kind: input, shape index: {}]   ;;  %s1219_s3 = inlined_call_operand.vmem [shape: f32[1,128], index: 3, kind: input, shape index: {}]   ;;  %s1220_s4 = inlined_call_operand.<no memory space> [shape: f32[1], index: 4, kind: input, shape index: {}]   ;;  %s1221_s5 = inlined_call_operand.vmem [shape: f32[256,1], index: 5, kind: output, shape index: {}]  }
   0x1   :  { %10 = sst [smem:[#allocation3]] %s1220_s4 }
   0x2 LB: > { %s822_s21 = sadd.s32 4294967295, %s995_s20   ;;  %p826_p0 = scmp.ge.s32.totalorder %s995_s20, 1  ;;  %s995_s20 = sphi %s1031_s20, %s16_s20  }
   0x3   : > { %p189_p1 = scmp.lt.s32.totalorder %s995_s20, 3 }
   0x5   : > { %p190_p2 = pnand %p826_p0, %p189_p1 }
   0x6   : > { %v973_v0 = vld [vmem:[%s1217_s1] sm:$0xff] (!%p190_p2)   ;;  %s827_s4 = sshll.u32 (!%p190_p2), %s822_s21, 4  ;;  %v974_v1 = vld [vmem:[%s1217_s1 + $0x8] sm:$0xff] (!%p190_p2)   ;;  %v997_v2 = vmov (!%p190_p2), 0.0   ;;  %v975_v3 = vld [vmem:[%s1217_s1 + $0x10] sm:$0xff] (!%p190_p2)   ;;  %vm262_vm0 = vcmask (!%p190_p2), 646144  }
   0x7   : > { %193 = sbr.rel (%p190_p2) target bundleno = 655 (0x28f), region = 40  ;;  %p218_p3 = scmp.lt.s32.totalorder (!%p190_p2), %s827_s4, 31  ;;  %900 = vmatprep.subr.bf16.mxu0 (!%p190_p2), %v973_v0  ;;  %230 = vst [vmem:[#allocation2] sm:$0xff] (!%p190_p2), %v997_v2  ;;  %231 = vst [vmem:[#allocation2 + $0x8] sm:$0xff] (!%p190_p2), %v997_v2  ;;  %v976_v4 = vld [vmem:[%s1217_s1 + $0x18] sm:$0xff] (!%p190_p2)   ;;  %v977_v11 = vld [vmem:[%s1217_s1 + $0x20] sm:$0xff] (!%p190_p2)  }
   0x8   : > { %901 = vmatpush3.bf16.msra.mxu0 (!%p190_p2), %v973_v0  ;;  %232 = vst [vmem:[#allocation2 + $0x10] sm:$0xff] (!%p190_p2), %v997_v2  ;;  %233 = vst [vmem:[#allocation2 + $0x18] sm:$0xff] (!%p190_p2), %v997_v2  ;;  %v981_v22 = vld [vmem:[%s1217_s1 + $0x40] sm:$0xff] (!%p190_p2)   ;;  %v982_v23 = vld [vmem:[%s1217_s1 + $0x48] sm:$0xff] (!%p190_p2)   ;;  %s731_s16 = sld [smem:[#allocation3]] (!%p190_p2)  ;;  %vm749_vm1 = vcmask (!%p190_p2), 7168  }
   0x9   : > { %234 = vst [vmem:[#allocation2 + $0x20] sm:$0xff] (!%p190_p2), %v997_v2  ;;  %235 = vst [vmem:[#allocation2 + $0x28] sm:$0xff] (!%p190_p2), %v997_v2  ;;  %902 = vmatprep.subr.bf16.mxu0 (!%p190_p2), %v974_v1  ;;  %v978_v24 = vld [vmem:[%s1217_s1 + $0x28] sm:$0xff] (!%p190_p2)   ;;  %932 = vmatprep.subr.bf16.mxu1 (!%p190_p2), %v981_v22  ;;  %v979_v28 = vld [vmem:[%s1217_s1 + $0x30] sm:$0xff] (!%p190_p2)  }
   0xa   : > { %236 = vst [vmem:[#allocation2 + $0x30] sm:$0xff] (!%p190_p2), %v997_v2  ;;  %237 = vst [vmem:[#allocation2 + $0x38] sm:$0xff] (!%p190_p2), %v997_v2  ;;  %933 = vmatpush3.bf16.msra.mxu1 (!%p190_p2), %v981_v22  ;;  %v983_v29 = vld [vmem:[%s1217_s1 + $0x50] sm:$0xff] (!%p190_p2)   ;;  %v984_v30 = vld [vmem:[%s1217_s1 + $0x58] sm:$0xff] (!%p190_p2)  }
   0xb   : > { %238 = vst [vmem:[#allocation2 + $0x40] sm:$0xff] (!%p190_p2), %v997_v2  ;;  %239 = vst [vmem:[#allocation2 + $0x48] sm:$0xff] (!%p190_p2), %v997_v2  ;;  %934 = vmatprep.subr.bf16.mxu1 (!%p190_p2), %v982_v23  ;;  %v980_v31 = vld [vmem:[%s1217_s1 + $0x38] sm:$0xff] (!%p190_p2)   ;;  %v985_v32 = vld [vmem:[%s1217_s1 + $0x60] sm:$0xff] (!%p190_p2)  }
   0xc   : > { %240 = vst [vmem:[#allocation2 + $0x50] sm:$0xff] (!%p190_p2), %v997_v2  ;;  %241 = vst [vmem:[#allocation2 + $0x58] sm:$0xff] (!%p190_p2), %v997_v2  ;;  %903 = vmatpush3.bf16.msra.mxu0 (!%p190_p2), %v974_v1  ;;  %v986_v38 = vld [vmem:[%s1217_s1 + $0x68] sm:$0xff] (!%p190_p2)   ;;  %v987_v55 = vld [vmem:[%s1217_s1 + $0x70] sm:$0xff] (!%p190_p2)  }
   0xd   : > { %242 = vst [vmem:[#allocation2 + $0x60] sm:$0xff] (!%p190_p2), %v997_v2  ;;  %243 = vst [vmem:[#allocation2 + $0x68] sm:$0xff] (!%p190_p2), %v997_v2  ;;  %904 = vmatprep.subr.bf16.mxu0 (!%p190_p2), %v975_v3  ;;  %v988_v56 = vld [vmem:[%s1217_s1 + $0x78] sm:$0xff] (!%p190_p2)   ;;  %v831_v57 = vld [vmem:[%s1218_s2] ss:$0 sm:$0xff] (!%p190_p2) }
   0xe   : > { %s1223_s4 = smov (!%p218_p3, %s827_s4), 31  ;;  %244 = vst [vmem:[#allocation2 + $0x70] sm:$0xff] %v997_v2  ;;  %245 = vst [vmem:[#allocation2 + $0x78] sm:$0xff] %v997_v2  ;;  %935 = vmatpush3.bf16.msra.mxu1 %v982_v23 }
   0xf   : > { %s828_s28 = sshll.u32 %s1223_s4, 3  ;;  %936 = vmatprep.subr.bf16.mxu1 %v983_v29 }
  0x10   : > { %s1056_s6 = scalar_lea.vmem %s1216_s0, %s828_s28  ;;  %905 = vmatpush3.bf16.msra.mxu0 %v975_v3  ;;  %s1179_s19 = scalar_lea.vmem %s1221_s5, %s828_s28 }
  0x11   : > { %v246_v5 = vld [vmem:[%s1056_s6] sm:$0xff]  ;;  %v247_v6 = vld [vmem:[%s1056_s6 + $0x8] sm:$0xff]  ;;  %v248_v7 = vld [vmem:[%s1056_s6 + $0x10] sm:$0xff]  ;;  %906 = vmatprep.subr.bf16.mxu0 %v976_v4 }
  0x12   : > { %263 = vst.msk [vmem:[#allocation2] sm:$0xff] %vm262_vm0, %v246_v5  ;;  %264 = vst.msk [vmem:[#allocation2 + $0x8] sm:$0xff] %vm262_vm0, %v247_v6  ;;  %v249_v8 = vld [vmem:[%s1056_s6 + $0x18] sm:$0xff]  ;;  %v250_v9 = vld [vmem:[%s1056_s6 + $0x20] sm:$0xff]  ;;  %937 = vmatpush3.bf16.msra.mxu1 %v983_v29 }
  0x13   : > { %265 = vst.msk [vmem:[#allocation2 + $0x10] sm:$0xff] %vm262_vm0, %v248_v7  ;;  %v251_v10 = vld [vmem:[%s1056_s6 + $0x28] sm:$0xff]  ;;  %266 = vst.msk [vmem:[#allocation2 + $0x18] sm:$0xff] %vm262_vm0, %v249_v8  ;;  %v252_v12 = vld [vmem:[%s1056_s6 + $0x30] sm:$0xff]  ;;  %938 = vmatprep.subr.bf16.mxu1 %v984_v30 }
  0x14   : > { %267 = vst.msk [vmem:[#allocation2 + $0x20] sm:$0xff] %vm262_vm0, %v250_v9  ;;  %268 = vst.msk [vmem:[#allocation2 + $0x28] sm:$0xff] %vm262_vm0, %v251_v10  ;;  %v253_v13 = vld [vmem:[%s1056_s6 + $0x38] sm:$0xff]  ;;  %v254_v14 = vld [vmem:[%s1056_s6 + $0x40] sm:$0xff]  ;;  %907 = vmatpush3.bf16.msra.mxu0 %v976_v4 }
  0x15   : > { %269 = vst.msk [vmem:[#allocation2 + $0x30] sm:$0xff] %vm262_vm0, %v252_v12  ;;  %270 = vst.msk [vmem:[#allocation2 + $0x38] sm:$0xff] %vm262_vm0, %v253_v13  ;;  %v255_v15 = vld [vmem:[%s1056_s6 + $0x48] sm:$0xff]  ;;  %v256_v16 = vld [vmem:[%s1056_s6 + $0x50] sm:$0xff]  ;;  %908 = vmatprep.subr.bf16.mxu0 %v977_v11 }
  0x16   : > { %271 = vst.msk [vmem:[#allocation2 + $0x40] sm:$0xff] %vm262_vm0, %v254_v14  ;;  %v257_v17 = vld [vmem:[%s1056_s6 + $0x58] sm:$0xff]  ;;  %272 = vst.msk [vmem:[#allocation2 + $0x48] sm:$0xff] %vm262_vm0, %v255_v15  ;;  %v258_v18 = vld [vmem:[%s1056_s6 + $0x60] sm:$0xff]  ;;  %939 = vmatpush3.bf16.msra.mxu1 %v984_v30 }
  0x17   : > { %273 = vst.msk [vmem:[#allocation2 + $0x50] sm:$0xff] %vm262_vm0, %v256_v16  ;;  %274 = vst.msk [vmem:[#allocation2 + $0x58] sm:$0xff] %vm262_vm0, %v257_v17  ;;  %v259_v19 = vld [vmem:[%s1056_s6 + $0x68] sm:$0xff]  ;;  %v260_v20 = vld [vmem:[%s1056_s6 + $0x70] sm:$0xff]  ;;  %940 = vmatprep.subr.bf16.mxu1 %v985_v32 }
  0x18   : > { %275 = vst.msk [vmem:[#allocation2 + $0x60] sm:$0xff] %vm262_vm0, %v258_v18  ;;  %276 = vst.msk [vmem:[#allocation2 + $0x68] sm:$0xff] %vm262_vm0, %v259_v19  ;;  %v261_v21 = vld [vmem:[%s1056_s6 + $0x78] sm:$0xff]  ;;  %909 = vmatpush3.bf16.msra.mxu0 %v977_v11 }
  0x19   : > { %277 = vst.msk [vmem:[#allocation2 + $0x70] sm:$0xff] %vm262_vm0, %v260_v20  ;;  %278 = vst.msk [vmem:[#allocation2 + $0x78] sm:$0xff] %vm262_vm0, %v261_v21  ;;  %v279_v25 = vld [vmem:[#allocation2] sm:$0xff]  ;;  %v280_v26 = vld [vmem:[#allocation2 + $0x8] sm:$0xff]  ;;  %910 = vmatprep.subr.bf16.mxu0 %v978_v24 }
  0x1a   : > { %v295_v27 = vpack.c.bf16 %v280_v26, %v279_v25  ;;  %v281_v33 = vld [vmem:[#allocation2 + $0x10] sm:$0xff]  ;;  %v282_v34 = vld [vmem:[#allocation2 + $0x18] sm:$0xff]  ;;  %941 = vmatpush3.bf16.msra.mxu1 %v985_v32 }
  0x1b   : > { %v283_v35 = vld [vmem:[#allocation2 + $0x20] sm:$0xff]  ;;  %v284_v36 = vld [vmem:[#allocation2 + $0x28] sm:$0xff]  ;;  %v296_v37 = vpack.c.bf16 %v282_v34, %v281_v33  ;;  %942 = vmatprep.subr.bf16.mxu1 %v986_v38 }
  0x1c   : > { %916 = vmatprep.mubr.bf16.mxu0 %v295_v27  ;;  %911 = vmatpush3.bf16.msra.mxu0 %v978_v24  ;;  %v297_v39 = vpack.c.bf16 %v284_v36, %v283_v35  ;;  %v285_v40 = vld [vmem:[#allocation2 + $0x30] sm:$0xff]  ;;  %v286_v41 = vld [vmem:[#allocation2 + $0x38] sm:$0xff] }
  0x1d   : > { %912 = vmatprep.subr.bf16.mxu0 %v979_v28  ;;  %v287_v42 = vld [vmem:[#allocation2 + $0x40] sm:$0xff]  ;;  %v288_v43 = vld [vmem:[#allocation2 + $0x48] sm:$0xff]  ;;  %v298_v44 = vpack.c.bf16 %v286_v41, %v285_v40 }
  0x1e   : > { %943 = vmatpush3.bf16.msra.mxu1 %v986_v38  ;;  %v299_v45 = vpack.c.bf16 %v288_v43, %v287_v42  ;;  %v289_v46 = vld [vmem:[#allocation2 + $0x50] sm:$0xff]  ;;  %v290_v47 = vld [vmem:[#allocation2 + $0x58] sm:$0xff] }
  0x1f   : > { %v291_v48 = vld [vmem:[#allocation2 + $0x60] sm:$0xff]  ;;  %v292_v49 = vld [vmem:[#allocation2 + $0x68] sm:$0xff]  ;;  %v300_v50 = vpack.c.bf16 %v290_v47, %v289_v46  ;;  %944 = vmatprep.subr.bf16.mxu1 %v987_v55 }
  0x20   : > { %913 = vmatpush3.bf16.msra.mxu0 %v979_v28  ;;  %v301_v51 = vpack.c.bf16 %v292_v49, %v291_v48  ;;  %v293_v52 = vld [vmem:[#allocation2 + $0x70] sm:$0xff]  ;;  %v294_v53 = vld [vmem:[#allocation2 + $0x78] sm:$0xff] }
  0x21   : > { %914 = vmatprep.subr.bf16.mxu0 %v980_v31  ;;  %v302_v54 = vpack.c.bf16 %v294_v53, %v293_v52 }
  0x22   : > { %945 = vmatpush3.bf16.msra.mxu1 %v987_v55 }
  0x23   : > { %946 = vmatprep.subr.bf16.mxu1 %v988_v56 }
  0x24   : > { %915 = vmatpush3.bf16.msra.mxu0 %v980_v31 }
  0x26   : > { %947 = vmatpush3.bf16.msra.mxu1 %v988_v56  ;;  %v1142_v56 = vld [vmem:[%s1219_s3] ss:$0 sm:$0xff] }
  0x27   : > { %917 = vmatmul.mubr.bf16.vlgmr.msra.gmra.mrb[0].mxu0 %v296_v37 }
  0x28   : > { %920 = vmatprep.mubr.bf16.mxu0 %v297_v39 }
  0x2f   : > { %921 = vmatmul.mubr.bf16.gmra.mrb[4].mxu0 %v298_v44 }
  0x30   : > { %924 = vmatprep.mubr.bf16.mxu0 %v299_v45 }
  0x37   : > { %925 = vmatmul.mubr.bf16.gmra.mrb[8].mxu0 %v300_v50  ;;  %v1135_v50 = vld [vmem:[%s1218_s2 + $0x1] ss:$0 sm:$0xff] }
  0x38   : > { %928 = vmatprep.mubr.bf16.mxu0 %v301_v51 }
  0x3f   : > { %929 = vmatmul.mubr.bf16.gmra.mrb[12].mxu0 %v302_v54 }
  0xfa   : > { %v918_v58 = vpop.f32.mrb[0].mxu0 }
  0xfb   : > { %v415_v59 = vadd.f32 %v918_v58, %v831_v57  ;;  %v406_v60 = vpop.f32.mrb[1].mxu0 }
  0xfc   : > { %v407_v61 = vadd.f32 %v831_v57, %v406_v60  ;;  %v919_v62 = vpop.f32.mrb[2].mxu0 }
  0xfd   : > { %v418_v63 = vadd.f32 %v919_v62, %v831_v57  ;;  %v409_v0 = vpop.f32.mrb[3].mxu0  ;;  %v471_v2 = vmax.f32 %v415_v59, 0.0 }
  0xfe   : > { %v410_v1 = vadd.f32 %v831_v57, %v409_v0  ;;  %v469_v4 = vmax.f32 %v407_v61, 0.0 }
  0xff   : > { %v472_v3 = vmax.f32 %v418_v63, 0.0 }
 0x100   : > { %v470_v5 = vmax.f32 %v410_v1, 0.0 }
 0x101   : > { %v486_v6 = vpack.c.bf16 %v472_v3, %v471_v2 }
 0x102   : > { %v922_v7 = vpop.f32.mrb[4].mxu0  ;;  %v485_v8 = vpack.c.bf16 %v470_v5, %v469_v4 }
 0x103   : > { %v431_v9 = vadd.f32 %v922_v7, %v831_v57  ;;  %v422_v10 = vpop.f32.mrb[5].mxu0 }
 0x104   : > { %v423_v11 = vadd.f32 %v831_v57, %v422_v10  ;;  %v923_v12 = vpop.f32.mrb[6].mxu0  ;;  %948 = vmatprep.mubr.bf16.mxu1 %v485_v8 }
 0x105   : > { %v434_v13 = vadd.f32 %v923_v12, %v831_v57  ;;  %v425_v14 = vpop.f32.mrb[7].mxu0  ;;  %949 = vmatmul.mubr.bf16.vlgmr.msra.gmra.mrb[0].mxu1 %v486_v6  ;;  %v475_v16 = vmax.f32 %v431_v9, 0.0 }
 0x106   : > { %v426_v15 = vadd.f32 %v831_v57, %v425_v14  ;;  %v473_v18 = vmax.f32 %v423_v11, 0.0 }
 0x107   : > { %v476_v17 = vmax.f32 %v434_v13, 0.0 }
 0x108   : > { %v474_v19 = vmax.f32 %v426_v15, 0.0 }
 0x109   : > { %v488_v20 = vpack.c.bf16 %v476_v17, %v475_v16 }
 0x10a   : > { %v487_v21 = vpack.c.bf16 %v474_v19, %v473_v18  ;;  %v926_v22 = vpop.f32.mrb[8].mxu0 }
 0x10b   : > { %v447_v23 = vadd.f32 %v926_v22, %v831_v57  ;;  %v438_v24 = vpop.f32.mrb[9].mxu0 }
 0x10c   : > { %v439_v25 = vadd.f32 %v831_v57, %v438_v24  ;;  %v927_v26 = vpop.f32.mrb[10].mxu0  ;;  %952 = vmatprep.mubr.bf16.mxu1 %v487_v21 }
 0x10d   : > { %v450_v27 = vadd.f32 %v927_v26, %v831_v57  ;;  %v441_v28 = vpop.f32.mrb[11].mxu0  ;;  %953 = vmatmul.mubr.bf16.gmra.mrb[4].mxu1 %v488_v20  ;;  %v479_v30 = vmax.f32 %v447_v23, 0.0 }
 0x10e   : > { %v442_v29 = vadd.f32 %v831_v57, %v441_v28  ;;  %v477_v32 = vmax.f32 %v439_v25, 0.0 }
 0x10f   : > { %v480_v31 = vmax.f32 %v450_v27, 0.0 }
 0x110   : > { %v478_v33 = vmax.f32 %v442_v29, 0.0 }
 0x111   : > { %v490_v34 = vpack.c.bf16 %v480_v31, %v479_v30 }
 0x112   : > { %v489_v35 = vpack.c.bf16 %v478_v33, %v477_v32  ;;  %v930_v36 = vpop.f32.mrb[12].mxu0 }
 0x113   : > { %v463_v37 = vadd.f32 %v930_v36, %v831_v57  ;;  %v454_v38 = vpop.f32.mrb[13].mxu0 }
 0x114   : > { %v455_v39 = vadd.f32 %v831_v57, %v454_v38  ;;  %v931_v40 = vpop.f32.mrb[14].mxu0  ;;  %956 = vmatprep.mubr.bf16.mxu1 %v489_v35 }
 0x115   : > { %v466_v41 = vadd.f32 %v931_v40, %v831_v57  ;;  %v457_v42 = vpop.f32.mrb[15].mxu0  ;;  %957 = vmatmul.mubr.bf16.gmra.mrb[8].mxu1 %v490_v34  ;;  %v483_v44 = vmax.f32 %v463_v37, 0.0 }
 0x116   : > { %v458_v43 = vadd.f32 %v831_v57, %v457_v42  ;;  %v481_v46 = vmax.f32 %v455_v39, 0.0 }
 0x117   : > { %v484_v45 = vmax.f32 %v466_v41, 0.0 }
 0x118   : > { %v482_v47 = vmax.f32 %v458_v43, 0.0 }
 0x119   : > { %v492_v48 = vpack.c.bf16 %v484_v45, %v483_v44 }
 0x11a   : > { %v491_v49 = vpack.c.bf16 %v482_v47, %v481_v46 }
 0x11c   : > { %960 = vmatprep.mubr.bf16.mxu1 %v491_v49 }
 0x11d   : > { %961 = vmatmul.mubr.bf16.gmra.mrb[12].mxu1 %v492_v48 }
 0x1d8   : > { %v950_v51 = vpop.f32.mrb[0].mxu1 }
 0x1d9   : > { %v606_v52 = vadd.f32 %v950_v51, %v1135_v50  ;;  %v597_v53 = vpop.f32.mrb[1].mxu1 }
 0x1da   : > { %v598_v54 = vadd.f32 %v1135_v50, %v597_v53  ;;  %v951_v55 = vpop.f32.mrb[2].mxu1 }
 0x1db   : > { %v662_v57 = vmax.f32 %v606_v52, 0.0  ;;  %v609_v58 = vadd.f32 %v951_v55, %v1135_v50  ;;  %v600_v59 = vpop.f32.mrb[3].mxu1 }
 0x1dc   : > { %v660_v60 = vmax.f32 %v598_v54, 0.0  ;;  %v601_v61 = vadd.f32 %v1135_v50, %v600_v59 }
 0x1dd   : > { %v663_v62 = vmax.f32 %v609_v58, 0.0  ;;  %v685_v63 = vmul.f32 %v1142_v56, %v662_v57 }
 0x1de   : > { %v661_v0 = vmax.f32 %v601_v61, 0.0  ;;  %v683_v1 = vmul.f32 %v1142_v56, %v660_v60 }
 0x1df   : > { %703 = vadd.xlane.f32.xlu1 %v685_v63  ;;  %v686_v5 = vmul.f32 %v1142_v56, %v663_v62 }
 0x1e0   : > { %v954_v2 = vpop.f32.mrb[4].mxu1  ;;  %699 = vadd.xlane.f32.xlu0 %v683_v1  ;;  %v684_v8 = vmul.f32 %v1142_v56, %v661_v0 }
 0x1e1   : > { %v622_v3 = vadd.f32 %v954_v2, %v1135_v50  ;;  %v613_v4 = vpop.f32.mrb[5].mxu1 }
 0x1e2   : > { %v614_v6 = vadd.f32 %v1135_v50, %v613_v4  ;;  %v955_v7 = vpop.f32.mrb[6].mxu1 }
 0x1e3   : > { %v666_v9 = vmax.f32 %v622_v3, 0.0  ;;  %v625_v10 = vadd.f32 %v955_v7, %v1135_v50  ;;  %705 = vadd.xlane.f32.xlu1 %v686_v5  ;;  %v616_v11 = vpop.f32.mrb[7].mxu1 }
 0x1e4   : > { %v617_v12 = vadd.f32 %v1135_v50, %v616_v11  ;;  %701 = vadd.xlane.f32.xlu0 %v684_v8  ;;  %v664_v15 = vmax.f32 %v614_v6, 0.0 }
 0x1e5   : > { %v667_v13 = vmax.f32 %v625_v10, 0.0  ;;  %v689_v14 = vmul.f32 %v1142_v56, %v666_v9 }
 0x1e6   : > { %v665_v16 = vmax.f32 %v617_v12, 0.0  ;;  %v687_v23 = vmul.f32 %v1142_v56, %v664_v15 }
 0x1e7   : > { %v690_v17 = vmul.f32 %v1142_v56, %v667_v13 }
 0x1e8   : > { %v958_v18 = vpop.f32.mrb[8].mxu1  ;;  %711 = vadd.xlane.f32.xlu0 %v689_v14  ;;  %v688_v27 = vmul.f32 %v1142_v56, %v665_v16 }
 0x1e9   : > { %v638_v19 = vadd.f32 %v958_v18, %v1135_v50  ;;  %713 = vadd.xlane.f32.xlu1 %v690_v17  ;;  %v629_v20 = vpop.f32.mrb[9].mxu1 }
 0x1ea   : > { %v630_v21 = vadd.f32 %v1135_v50, %v629_v20  ;;  %v959_v22 = vpop.f32.mrb[10].mxu1 }
 0x1eb   : > { %v670_v24 = vmax.f32 %v638_v19, 0.0  ;;  %v641_v25 = vadd.f32 %v959_v22, %v1135_v50  ;;  %v632_v26 = vpop.f32.mrb[11].mxu1 }
 0x1ec   : > { %v633_v28 = vadd.f32 %v1135_v50, %v632_v26  ;;  %707 = vadd.xlane.f32.xlu0 %v687_v23  ;;  %v668_v31 = vmax.f32 %v630_v21, 0.0 }
 0x1ed   : > { %v671_v29 = vmax.f32 %v641_v25, 0.0  ;;  %709 = vadd.xlane.f32.xlu1 %v688_v27  ;;  %v693_v30 = vmul.f32 %v1142_v56, %v670_v24 }
 0x1ee   : > { %v669_v32 = vmax.f32 %v633_v28, 0.0  ;;  %v691_v39 = vmul.f32 %v1142_v56, %v668_v31 }
 0x1ef   : > { %v694_v33 = vmul.f32 %v1142_v56, %v671_v29 }
 0x1f0   : > { %v962_v34 = vpop.f32.mrb[12].mxu1  ;;  %719 = vadd.xlane.f32.xlu0 %v693_v30  ;;  %v692_v41 = vmul.f32 %v1142_v56, %v669_v32 }
 0x1f1   : > { %v645_v35 = vpop.f32.mrb[13].mxu1  ;;  %721 = vadd.xlane.f32.xlu1 %v694_v33  ;;  %v654_v36 = vadd.f32 %v962_v34, %v1135_v50 }
 0x1f2   : > { %v646_v37 = vadd.f32 %v1135_v50, %v645_v35  ;;  %v963_v38 = vpop.f32.mrb[14].mxu1 }
 0x1f3   : > { %v648_v40 = vpop.f32.mrb[15].mxu1  ;;  %v657_v43 = vadd.f32 %v963_v38, %v1135_v50  ;;  %v674_v45 = vmax.f32 %v654_v36, 0.0 }
 0x1f4   : > { %v672_v42 = vmax.f32 %v646_v37, 0.0  ;;  %v649_v44 = vadd.f32 %v1135_v50, %v648_v40  ;;  %715 = vadd.xlane.f32.xlu0 %v691_v39  ;;  %v732_v50 = vstv %s731_s16 }
 0x1f5   : > { %717 = vadd.xlane.f32.xlu1 %v692_v41  ;;  %v675_v48 = vmax.f32 %v657_v43, 0.0  ;;  %v697_v51 = vmul.f32 %v1142_v56, %v674_v45 }
 0x1f6   : > { %v673_v46 = vmax.f32 %v649_v44, 0.0  ;;  %v695_v47 = vmul.f32 %v1142_v56, %v672_v42 }
 0x1f7   : > { %v698_v52 = vmul.f32 %v1142_v56, %v675_v48 }
 0x1f8   : > { %723 = vadd.xlane.f32.xlu0 %v695_v47  ;;  %v696_v49 = vmul.f32 %v1142_v56, %v673_v46 }
 0x1fa   : > { %725 = vadd.xlane.f32.xlu1 %v696_v49 }
 0x1fc   : > { %727 = vadd.xlane.f32.xlu0 %v697_v51 }
 0x1fe   : > { %729 = vadd.xlane.f32.xlu1 %v698_v52 }
 0x26c   : > { %v704_v53 = vpop.xlane.xlu1 %703 }
 0x26d   : > { %v735_v54 = vadd.f32 %v732_v50, %v704_v53  ;;  %v700_v55 = vpop.xlane.xlu0 %699 }
 0x26e   : > { %v733_v56 = vadd.f32 %v732_v50, %v700_v55 }
 0x26f   : > { %752 = vst.msk [vmem:[%s1179_s19 + $0x10] sm:$0xff] %vm749_vm1, %v735_v54 }
 0x270   : > { %750 = vst.msk [vmem:[%s1179_s19] sm:$0xff] %vm749_vm1, %v733_v56  ;;  %v706_v57 = vpop.xlane.xlu1 %705 }
 0x271   : > { %v736_v58 = vadd.f32 %v732_v50, %v706_v57  ;;  %v702_v59 = vpop.xlane.xlu0 %701 }
 0x272   : > { %v734_v60 = vadd.f32 %v732_v50, %v702_v59 }
 0x273   : > { %753 = vst.msk [vmem:[%s1179_s19 + $0x18] sm:$0xff] %vm749_vm1, %v736_v58 }
 0x274   : > { %751 = vst.msk [vmem:[%s1179_s19 + $0x8] sm:$0xff] %vm749_vm1, %v734_v60 }
 0x275   : > { %v712_v61 = vpop.xlane.xlu0 %711 }
 0x276   : > { %v739_v62 = vadd.f32 %v732_v50, %v712_v61  ;;  %v714_v63 = vpop.xlane.xlu1 %713 }
 0x277   : > { %v740_v0 = vadd.f32 %v732_v50, %v714_v63 }
 0x278   : > { %756 = vst.msk [vmem:[%s1179_s19 + $0x30] sm:$0xff] %vm749_vm1, %v739_v62 }
 0x279   : > { %757 = vst.msk [vmem:[%s1179_s19 + $0x38] sm:$0xff] %vm749_vm1, %v740_v0  ;;  %v708_v1 = vpop.xlane.xlu0 %707 }
 0x27a   : > { %v737_v2 = vadd.f32 %v732_v50, %v708_v1  ;;  %v710_v3 = vpop.xlane.xlu1 %709 }
 0x27b   : > { %v738_v4 = vadd.f32 %v732_v50, %v710_v3 }
 0x27c   : > { %754 = vst.msk [vmem:[%s1179_s19 + $0x20] sm:$0xff] %vm749_vm1, %v737_v2 }
 0x27d   : > { %755 = vst.msk [vmem:[%s1179_s19 + $0x28] sm:$0xff] %vm749_vm1, %v738_v4  ;;  %v720_v5 = vpop.xlane.xlu0 %719 }
 0x27e   : > { %v743_v6 = vadd.f32 %v732_v50, %v720_v5  ;;  %v722_v7 = vpop.xlane.xlu1 %721 }
 0x27f   : > { %v744_v8 = vadd.f32 %v732_v50, %v722_v7 }
 0x280   : > { %760 = vst.msk [vmem:[%s1179_s19 + $0x50] sm:$0xff] %vm749_vm1, %v743_v6 }
 0x281   : > { %761 = vst.msk [vmem:[%s1179_s19 + $0x58] sm:$0xff] %vm749_vm1, %v744_v8  ;;  %v716_v9 = vpop.xlane.xlu0 %715 }
 0x282   : > { %v741_v10 = vadd.f32 %v732_v50, %v716_v9  ;;  %v718_v11 = vpop.xlane.xlu1 %717 }
 0x283   : > { %v742_v12 = vadd.f32 %v732_v50, %v718_v11 }
 0x284   : > { %758 = vst.msk [vmem:[%s1179_s19 + $0x40] sm:$0xff] %vm749_vm1, %v741_v10 }
 0x285   : > { %759 = vst.msk [vmem:[%s1179_s19 + $0x48] sm:$0xff] %vm749_vm1, %v742_v12  ;;  %v724_v13 = vpop.xlane.xlu0 %723 }
 0x286   : > { %v745_v14 = vadd.f32 %v732_v50, %v724_v13 }
 0x287   : > { %v726_v15 = vpop.xlane.xlu1 %725 }
 0x288   : > { %762 = vst.msk [vmem:[%s1179_s19 + $0x60] sm:$0xff] %vm749_vm1, %v745_v14  ;;  %v746_v16 = vadd.f32 %v732_v50, %v726_v15 }
 0x289   : > { %v728_v17 = vpop.xlane.xlu0 %727 }
 0x28a   : > { %763 = vst.msk [vmem:[%s1179_s19 + $0x68] sm:$0xff] %vm749_vm1, %v746_v16  ;;  %v747_v18 = vadd.f32 %v732_v50, %v728_v17 }
 0x28b   : > { %v730_v19 = vpop.xlane.xlu1 %729 }
 0x28c   : > { %764 = vst.msk [vmem:[%s1179_s19 + $0x70] sm:$0xff] %vm749_vm1, %v747_v18  ;;  %v748_v20 = vadd.f32 %v732_v50, %v730_v19 }
 0x28e   : > { %765 = vst.msk [vmem:[%s1179_s19 + $0x78] sm:$0xff] %vm749_vm1, %v748_v20 }
 0x28f PF: > { %s16_s20 = sadd.s32 1, %s995_s20  }
 0x290   : > { %p13_p4 = scmp.ge.s32.totalorder %s16_s20, 4  }
 0x292   :  { %15 = sbr.rel (!%p13_p4) target bundleno = 2 (0x2), region = 71 }

</bundles_post_ra>
